<compile_context>
chip_gen: v7x
topology: tpu7x:2x2x1
jax: 0.10.0
libtpu: 0.0.40
codegen_flags: <defaults>
</compile_context>

<pallas_src>
import math

import jax
import jax.numpy as jnp
from jax.experimental import pallas as pl
from jax.experimental.pallas import tpu as pltpu


def _round_up(x: int, m: int) -> int:
    return ((x + m - 1) // m) * m


def _make_decoder_kernel(*, batch: int, nlabels: int, block_b: int):
    """One batch tile per grid step.

    Refs at step i:
      x_ref      [block_b, H]       activation tile (native dtype, no padding)
      w_ref      [H, L_pad]         pre-transposed, label-padded weight (resident)
      b_ref      [1, L_pad]         padded bias (f32, resident)
      gold_ref   [block_b, L_pad]   int8 gold tile ({-100, 0, 1} contract)
      logits_ref [block_b, L_pad]   f32 logits tile (lane-dense store)
      psum_ref   [1, 1, 128]        per-tile partial BCE sum
    """
    def kernel(x_ref, w_ref, b_ref, gold_ref, logits_ref, psum_ref):
        # logits = x @ W_t + b   (native-dtype MXU inputs, f32 accumulate)
        logits = jnp.dot(x_ref[...], w_ref[...],
                         preferred_element_type=jnp.float32)
        logits = logits + b_ref[...]
        logits_ref[...] = logits

        # gold[gold == -100] = 0, then float32.
        g = gold_ref[...].astype(jnp.float32)
        z = jnp.where(g == -100.0, 0.0, g)

        # Numerically-stable BCE-with-logits on the full lane-dense tile.
        elem = (jnp.maximum(logits, 0.0) - logits * z
                + jnp.log(1.0 + jnp.exp(-jnp.abs(logits))))

        # Mask: real batch rows only (covers the ragged last tile, whose
        # out-of-bounds rows contain implementation-defined data) and columns
        # 1..nlabels-1 (PyTorch's [:, 1:]); padded label lanes excluded.
        col = jax.lax.broadcasted_iota(jnp.int32, elem.shape, 1)
        row = (jax.lax.broadcasted_iota(jnp.int32, elem.shape, 0)
               + pl.program_id(0) * block_b)
        valid = (col >= 1) & (col < nlabels) & (row < batch)
        partial = jnp.sum(jnp.where(valid, elem, 0.0))

        # Single-row partial sum; summed across tiles in the wrapper so the
        # batch grid axis carries no state and stays "parallel".
        psum_ref[...] = jnp.full(psum_ref.shape, partial, jnp.float32)

    return kernel


def _choose_block_b(batch: int, hidden: int, itemsize: int, block_b):
    """Batch-tile size: VMEM-budgeted, >=2 grid steps for v7x when possible."""
    per_buf_budget = 6 << 20                      # ~6 MiB per x buffer (x2 bufs)
    cap = max(32, ((per_buf_budget // max(hidden * itemsize, 1)) // 32) * 32)
    bB = _round_up(block_b, 32) if block_b is not None else 2048
    bB = min(bB, cap)
    if batch > 32:                                # v7x megacore: >= 2 grid steps
        bB = min(bB, _round_up(pl.cdiv(batch, 2), 32))
    return max(32, min(bB, _round_up(batch, 32)))


def machamp_multiclas_decoder(mlm_out, weight, bias, gold, loss_weight=1.0,
                              threshold=0.7, block_b=None):
    """Pallas implementation of MachampMulticlasDecoder.forward.

    mlm_out: [B, H] f32/bf16 (kept in its native dtype all the way to the MXU)
    weight : [L, H] (torch.nn.Linear layout)
    bias   : [L]
    gold   : [B, L] int, entries restricted to {-100, 0, 1} (int8 contract)

    Returns dict with 'logits' [B, L] f32, 'loss' scalar, 'preds' [B, L] bool.
    """
    B, H = mlm_out.shape
    L = weight.shape[0]
    L_pad = _round_up(max(L, 1), 128)    # lane-dense logits/gold tiles; for tiny
                                         # L this is write amplification, but the
                                         # traffic is small next to reading x.

    x_item = jnp.dtype(mlm_out.dtype).itemsize
    bB = _choose_block_b(B, H, x_item, block_b)
    num_tiles = pl.cdiv(B, bB)

    # One-time parameter prep (in production this lives at parameter-load time,
    # not per call): transpose to [H, L] so the kernel contraction is a plain
    # NN matmul, pad the label dim to a 128 multiple, keep the MXU dtype native.
    w_t = jnp.pad(weight.T.astype(mlm_out.dtype), ((0, 0), (0, L_pad - L)))
    b_p = jnp.pad(bias.astype(jnp.float32).reshape(1, L),
                  ((0, 0), (0, L_pad - L)))
    # gold is padded along L only (cheap, int8); never along B.
    g_p = jnp.pad(gold.astype(jnp.int8), ((0, 0), (0, L_pad - L)))

    # Explicit scoped-VMEM budget (covers v5e's 16 MiB default; stays well under
    # v7x's 64 MiB physical since bB is capped by the per-buffer budget).
    w_item = jnp.dtype(w_t.dtype).itemsize
    est = (2 * bB * _round_up(H, 128) * x_item     # x tiles (double-buffered)
           + 2 * _round_up(H, 8) * L_pad * w_item  # resident weight
           + 2 * 8 * L_pad * 4                     # bias
           + 2 * bB * L_pad * 1                    # gold int8 tiles
           + 2 * bB * L_pad * 4                    # logits f32 tiles
           + 2 * 8 * 128 * 4)                      # psum
    vmem_limit = int(min(max(est + (16 << 20), 32 << 20), 48 << 20))

    kernel = _make_decoder_kernel(batch=B, nlabels=L, block_b=bB)

    logits_full, psums = pl.pallas_call(
        kernel,
        out_shape=(
            jax.ShapeDtypeStruct((B, L_pad), jnp.float32),
            jax.ShapeDtypeStruct((num_tiles, 1, 128), jnp.float32),
        ),
        grid_spec=pltpu.PrefetchScalarGridSpec(
            num_scalar_prefetch=0,
            grid=(num_tiles,),
            in_specs=[
                pl.BlockSpec((bB, H), lambda i: (i, 0)),      # x tile (unpadded)
                pl.BlockSpec((H, L_pad), lambda i: (0, 0)),   # weight (resident)
                pl.BlockSpec((1, L_pad), lambda i: (0, 0)),   # bias (resident)
                pl.BlockSpec((bB, L_pad), lambda i: (i, 0)),  # gold tile
            ],
            out_specs=(
                pl.BlockSpec((bB, L_pad), lambda i: (i, 0)),    # logits tile
                pl.BlockSpec((1, 1, 128), lambda i: (i, 0, 0)),  # partial loss
            ),
        ),
        compiler_params=pltpu.CompilerParams(
            dimension_semantics=("parallel",),   # no carried state -> megacore OK
            vmem_limit_bytes=vmem_limit,
        ),
    )(mlm_out, w_t, b_p, g_p)

    logits = logits_full[:, :L]
    # preds fused out of the kernel: computed here from the returned logits so
    # the kernel doesn't write a second [B, L_pad] array.
    preds = jax.nn.sigmoid(logits) > threshold
    # PyTorch: mean over logits[:, 1:] -> B*(L-1) elements.
    # TODO(synk): L == 1 gives a 0 denominator (mirrors torch's NaN mean-of-empty).
    denom = jnp.float32(B * (L - 1))
    loss = jnp.float32(loss_weight) * jnp.sum(psums[:, 0, 0]) / denom
    return {"logits": logits, "loss": loss, "preds": preds}


def _reference(mlm_out, weight, bias, gold, loss_weight=1.0, threshold=0.7):
    """Pure-JAX reference mirroring the PyTorch forward, for verification."""
    x = mlm_out.astype(jnp.float32)
    w = weight.astype(jnp.float32)
    logits = jnp.dot(x, w.T, precision=jax.lax.Precision.HIGHEST) + bias.astype(jnp.float32)
    g = jnp.where(gold == -100, 0, gold).astype(jnp.float32)
    lg, z = logits[:, 1:], g[:, 1:]
    elem = jnp.maximum(lg, 0.0) - lg * z + jnp.log(1.0 + jnp.exp(-jnp.abs(lg)))
    preds = jax.nn.sigmoid(logits) > threshold
    return logits, loss_weight * jnp.mean(elem), preds


def _run_case(key, B, H, L, loss_weight, block_b, dtype, threshold=0.7):
    k_x, k_w, k_b, k_g = jax.random.split(key, 4)
    mlm_out = jax.random.normal(k_x, (B, H), dtype=jnp.float32).astype(dtype)
    weight = (jax.random.normal(k_w, (L, H), dtype=jnp.float32)
              * (1.0 / math.sqrt(H))).astype(dtype)
    bias = jax.random.normal(k_b, (L,), dtype=jnp.float32) * 0.01
    gold = (jax.random.uniform(k_g, (B, L)) > 0.5).astype(jnp.int32)
    gold = gold.at[0, min(2, L - 1)].set(-100)   # exercise the -100 masking path

    out = machamp_multiclas_decoder(mlm_out, weight, bias, gold,
                                    loss_weight=loss_weight,
                                    threshold=threshold, block_b=block_b)
    jax.block_until_ready(out["logits"])
    jax.block_until_ready(out["loss"])
    jax.block_until_ready(out["preds"])

    ref_logits, ref_loss, ref_preds = _reference(mlm_out, weight, bias, gold,
                                                 loss_weight, threshold)
    assert out["logits"].shape == (B, L) and out["preds"].shape == (B, L)
    # Tolerances cover XLA/Mosaic f32-matmul MXU precision differences on TPU.
    assert jnp.allclose(out["logits"], ref_logits, atol=5e-2, rtol=5e-2), "logits mismatch"
    assert jnp.allclose(out["loss"], ref_loss, atol=1e-2, rtol=1e-2), "loss mismatch"
    # preds may legitimately flip where a logit sits at the decision boundary;
    # require agreement away from it.
    thr_logit = math.log(threshold / (1.0 - threshold))
    away = jnp.abs(ref_logits - thr_logit) > 1e-1
    assert bool(jnp.all(jnp.where(away, out["preds"] == ref_preds, True))), "preds mismatch"


if __name__ == "__main__":
    key = jax.random.PRNGKey(0)
    k1, k2, k3 = jax.random.split(key, 3)
    # small shape from the module (batch=2, hidden=32, nlabels=8): one ragged tile
    _run_case(k1, B=2, H=32, L=8, loss_weight=1.0, block_b=None, dtype=jnp.float32)
    # multi-tile path: ragged last batch tile, H not a multiple of 128
    _run_case(k2, B=300, H=96, L=5, loss_weight=0.5, block_b=64, dtype=jnp.float32)
    # bf16 activations/weights straight to the MXU; 2 grid steps (megacore path)
    _run_case(k3, B=64, H=64, L=8, loss_weight=1.0, block_b=None, dtype=jnp.bfloat16)
    print("KERNEL_OK")
</pallas_src>

<mosaic_0001>
module attributes {stable_mosaic.version = 11 : i64} {
  func.func @kernel(%arg0: i32, %arg1: memref<32x32xf32, #tpu.memory_space<vmem>>, %arg2: memref<32x128xf32, #tpu.memory_space<vmem>>, %arg3: memref<1x128xf32, #tpu.memory_space<vmem>>, %arg4: memref<32x128xi8, #tpu.memory_space<vmem>>, %arg5: memref<32x128xf32, #tpu.memory_space<vmem>>, %arg6: memref<1x1x128xf32, #tpu.memory_space<vmem>>) attributes {dimension_semantics = [#tpu.dimension_semantics<parallel>], iteration_bounds = array<i64: 1>, scalar_prefetch = 0 : i64, scratch_operands = 0 : i64, tpu.core_type = #tpu.core_type<tc>, window_params = [{transform_indices = @transform_0, window_bounds = array<i64: 32, 32>}, {pipeline_mode = #tpu.pipeline_mode<synchronous>, transform_indices = @transform_1, window_bounds = array<i64: 32, 128>}, {pipeline_mode = #tpu.pipeline_mode<synchronous>, transform_indices = @transform_2, window_bounds = array<i64: 1, 128>}, {transform_indices = @transform_3, window_bounds = array<i64: 32, 128>}, {transform_indices = @transform_4, window_bounds = array<i64: 32, 128>}, {transform_indices = @transform_5, window_bounds = array<i64: 1, 1, 128>}]} {
    %c0 = arith.constant 0 : index
    %c0_0 = arith.constant 0 : index
    %0 = vector.load %arg1[%c0, %c0_0] : memref<32x32xf32, #tpu.memory_space<vmem>>, vector<32x32xf32>
    %c0_1 = arith.constant 0 : index
    %c0_2 = arith.constant 0 : index
    %1 = vector.load %arg2[%c0_1, %c0_2] : memref<32x128xf32, #tpu.memory_space<vmem>>, vector<32x128xf32>
    %cst = arith.constant dense<0.000000e+00> : vector<32x128xf32>
    %2 = tpu.matmul %0, %1, %cst {dimension_numbers = #tpu.dot_dimension_numbers<[1], [0], [0], [1], [0, 0, 1, 1], [], []>} : vector<32x32xf32>, vector<32x128xf32>, vector<32x128xf32> -> vector<32x128xf32>
    %c0_3 = arith.constant 0 : index
    %c0_4 = arith.constant 0 : index
    %3 = vector.load %arg3[%c0_3, %c0_4] : memref<1x128xf32, #tpu.memory_space<vmem>>, vector<1x128xf32>
    %4 = vector.broadcast %3 : vector<1x128xf32> to vector<32x128xf32>
    %5 = arith.addf %2, %4 : vector<32x128xf32>
    %c0_5 = arith.constant 0 : index
    %c0_6 = arith.constant 0 : index
    %6 = vector.load %arg5[%c0_5, %c0_6] : memref<32x128xf32, #tpu.memory_space<vmem>>, vector<32x128xf32>
    tpu.vector_store %arg5[%c0_5, %c0_6], %5 {strides = array<i32>} : memref<32x128xf32, #tpu.memory_space<vmem>>, vector<32x128xf32>,
    %c0_7 = arith.constant 0 : index
    %c0_8 = arith.constant 0 : index
    %7 = vector.load %arg4[%c0_7, %c0_8] : memref<32x128xi8, #tpu.memory_space<vmem>>, vector<32x128xi8>
    %8 = arith.sitofp %7 : vector<32x128xi8> to vector<32x128xf32>
    %cst_9 = arith.constant -1.000000e+02 : f32
    %9 = vector.broadcast %cst_9 : f32 to vector<32x128xf32>
    %10 = arith.cmpf oeq, %8, %9 : vector<32x128xf32>
    %cst_10 = arith.constant 0.000000e+00 : f32
    %11 = vector.broadcast %cst_10 : f32 to vector<32x128xf32>
    %12 = arith.select %10, %11, %8 : vector<32x128xi1>, vector<32x128xf32>
    %cst_11 = arith.constant 0.000000e+00 : f32
    %13 = vector.broadcast %cst_11 : f32 to vector<32x128xf32>
    %14 = arith.maximumf %5, %13 : vector<32x128xf32>
    %15 = arith.mulf %5, %12 : vector<32x128xf32>
    %16 = arith.subf %14, %15 : vector<32x128xf32>
    %17 = math.absf %5 : vector<32x128xf32>
    %cst_12 = arith.constant 0.000000e+00 : f32
    %18 = vector.broadcast %cst_12 : f32 to vector<32x128xf32>
    %19 = arith.subf %18, %17 : vector<32x128xf32>
    %20 = math.exp %19 : vector<32x128xf32>
    %cst_13 = arith.constant 1.000000e+00 : f32
    %21 = vector.broadcast %cst_13 : f32 to vector<32x128xf32>
    %22 = arith.addf %21, %20 : vector<32x128xf32>
    %23 = math.log %22 : vector<32x128xf32>
    %24 = arith.addf %16, %23 : vector<32x128xf32>
    %25 = tpu.iota {dimensions = array<i32: 1>} : vector<32x128xi32>
    %26 = tpu.iota {dimensions = array<i32: 0>} : vector<32x128xi32>
    %c32_i32 = arith.constant 32 : i32
    %27 = arith.muli %arg0, %c32_i32 : i32
    %28 = vector.broadcast %27 : i32 to vector<32x128xi32>
    %29 = arith.addi %26, %28 : vector<32x128xi32>
    %c1_i32 = arith.constant 1 : i32
    %30 = vector.broadcast %c1_i32 : i32 to vector<32x128xi32>
    %31 = arith.cmpi sge, %25, %30 : vector<32x128xi32>
    %c8_i32 = arith.constant 8 : i32
    %32 = vector.broadcast %c8_i32 : i32 to vector<32x128xi32>
    %33 = arith.cmpi slt, %25, %32 : vector<32x128xi32>
    %34 = arith.andi %31, %33 : vector<32x128xi1>
    %c2_i32 = arith.constant 2 : i32
    %35 = vector.broadcast %c2_i32 : i32 to vector<32x128xi32>
    %36 = arith.cmpi slt, %29, %35 : vector<32x128xi32>
    %37 = arith.andi %34, %36 : vector<32x128xi1>
    %cst_14 = arith.constant 0.000000e+00 : f32
    %38 = vector.broadcast %cst_14 : f32 to vector<32x128xf32>
    %39 = arith.select %37, %24, %38 : vector<32x128xi1>, vector<32x128xf32>
    %40 = vector.shape_cast %39 : vector<32x128xf32> to vector<1x32x128xf32>
    %cst_15 = arith.constant dense<0.000000e+00> : vector<1xf32>
    %41 = vector.multi_reduction <add>, %40, %cst_15 [1, 2] : vector<1x32x128xf32> to vector<1xf32>
    %42 = vector.shape_cast %41 : vector<1xf32> to vector<1x1x1xf32>
    %43 = vector.extract %42[0, 0, 0] : f32 from vector<1x1x1xf32>
    %44 = vector.broadcast %43 : f32 to vector<1x1x128xf32>
    %c0_16 = arith.constant 0 : index
    %c0_17 = arith.constant 0 : index
    %c0_18 = arith.constant 0 : index
    %45 = vector.load %arg6[%c0_16, %c0_17, %c0_18] : memref<1x1x128xf32, #tpu.memory_space<vmem>>, vector<1x1x128xf32>
    tpu.vector_store %arg6[%c0_16, %c0_17, %c0_18], %44 {strides = array<i32>} : memref<1x1x128xf32, #tpu.memory_space<vmem>>, vector<1x1x128xf32>,
    return
  }
  func.func @transform_0(%arg0: i32) -> (i32, i32) {
    %c0_i32 = arith.constant 0 : i32
    %c0_i32_0 = arith.constant 0 : i32
    return %arg0, %c0_i32 : i32, i32
  }
  func.func @transform_1(%arg0: i32) -> (i32, i32) {
    %c0_i32 = arith.constant 0 : i32
    %c0_i32_0 = arith.constant 0 : i32
    %c0_i32_1 = arith.constant 0 : i32
    return %c0_i32, %c0_i32_0 : i32, i32
  }
  func.func @transform_2(%arg0: i32) -> (i32, i32) {
    %c0_i32 = arith.constant 0 : i32
    %c0_i32_0 = arith.constant 0 : i32
    %c0_i32_1 = arith.constant 0 : i32
    return %c0_i32, %c0_i32_0 : i32, i32
  }
  func.func @transform_3(%arg0: i32) -> (i32, i32) {
    %c0_i32 = arith.constant 0 : i32
    %c0_i32_0 = arith.constant 0 : i32
    return %arg0, %c0_i32 : i32, i32
  }
  func.func @transform_4(%arg0: i32) -> (i32, i32) {
    %c0_i32 = arith.constant 0 : i32
    %c0_i32_0 = arith.constant 0 : i32
    return %arg0, %c0_i32 : i32, i32
  }
  func.func @transform_5(%arg0: i32) -> (i32, i32, i32) {
    %c0_i32 = arith.constant 0 : i32
    %c0_i32_0 = arith.constant 0 : i32
    %c0_i32_1 = arith.constant 0 : i32
    return %arg0, %c0_i32, %c0_i32_0 : i32, i32, i32
  }
}

</mosaic_0001>

<bundles_post_ra>
// kernel: tpu_custom_call.1
= control target key start
LH: loop header
LB: loop body
LE: loop exit
PB: predicated region body
PF: predicated region fallthrough
CT: control target
= control target key end

     0   :  { %11 = vsyncpa [#allocation3], 0  ;;  %s594_s0 = inlined_call_operand.hbm [shape: f32[2,32], index: 0, kind: input, shape index: {}]   ;;  %s595_s1 = inlined_call_operand.hbm [shape: f32[32,128], index: 1, kind: input, shape index: {}]   ;;  %s596_s2 = inlined_call_operand.vmem [shape: f32[1,128], index: 2, kind: input, shape index: {}]   ;;  %s597_s3 = inlined_call_operand.vmem [shape: s8[2,128], index: 3, kind: input, shape index: {}]   ;;  %s598_s4 = inlined_call_operand.hbm [shape: f32[2,128], index: 4, kind: output, shape index: {0}]   ;;  %s599_s5 = inlined_call_operand.hbm [shape: f32[1,1,128], index: 5, kind: output, shape index: {1}]  }
   0x1   :  { %12 = vsyncpa [#allocation6], 0 }
   0x2   :  { %13 = vsyncpa [#allocation4], 0 }
   0x3   :  { %14 = vsyncpa [#allocation9], 0 }
   0x4   :  { %19 = vsyncadd [#allocation3], 480  ;;  %s489_s18 = smov [#allocation2]   ;;  %s393_s22 = scalar_lea.hbm %s594_s0, 32 }
   0x5   :  { %s20_s19 = sshll.u32 %s489_s18, 4  ;;  %p394_p0 = scmp.ne.s32.totalorder %s594_s0, %s393_s22  ;;  %s21_s19 = int_to_ptr.vmem [resolvable:$true] %s20_s19 }
   0x6   :  { %p397_p1 = scmp.lt.u32.totalorder %s393_s22, %s594_s0 }
   0x8   :  { %p399_p2 = pnand %p397_p1, %p394_p0 }
   0xa   :  { %402 = shalt.err (!%p399_p2)
}
   0xb   :  { %s403_s27 = scalar_lea.vmem %s21_s19, 32  ;;  %s407_s28 = scalar_lea.vmem %s21_s19, 512 }
   0xc   :  { %p404_p3 = scmp.ne.s32.totalorder %s21_s19, %s403_s27  ;;  %p408_p4 = scmp.lt.s32.totalorder %s21_s19, %s21_s19 }
   0xd   :  { %p409_p5 = scmp.lt.s32.totalorder %s407_s28, %s403_s27 }
   0xf   :  { %p410_p6 = por %p409_p5, %p408_p4 }
  0x11   :  { %p411_p7 = pnand %p410_p6, %p404_p3 }
  0x13   :  { %414 = shalt.err (!%p411_p7)
}
  0x14   :  { %s490_s29 = smov 32   ;;  %s491_s30 = smov 2  }
  0x15   :  { %26 = dma.hbm_to_vmem [thread:$0]  %s594_s0, 32, %s21_s19, [#allocation3], %s490_s29, %s490_s29, %s491_s30  }
  0x16   :  { %s492_s8 = smov [#allocation5]   ;;  %s415_s12 = scalar_lea.hbm %s595_s1, 512 }
  0x17   :  { %s32_s9 = sshll.u32 %s492_s8, 4  ;;  %p416_p8 = scmp.ne.s32.totalorder %s595_s1, %s415_s12  ;;  %s33_s9 = int_to_ptr.vmem [resolvable:$true] %s32_s9 }
  0x18   :  { %p419_p9 = scmp.lt.u32.totalorder %s415_s12, %s595_s1 }
  0x1a   :  { %p421_p10 = pnand %p419_p9, %p416_p8 }
  0x1c   :  { %424 = shalt.err (!%p421_p10)
}
  0x1d   :  { %s425_s17 = scalar_lea.vmem %s33_s9, 512  ;;  %p430_p12 = scmp.lt.s32.totalorder %s33_s9, %s33_s9 }
  0x1e   :  { %p426_p11 = scmp.ne.s32.totalorder %s33_s9, %s425_s17  ;;  %p431_p13 = scmp.lt.s32.totalorder %s425_s17, %s425_s17 }
  0x20   :  { %p432_p0 = por %p431_p13, %p430_p12 }
  0x22   :  { %p433_p1 = pnand %p432_p0, %p426_p11 }
  0x24   :  { %436 = shalt.err (!%p433_p1)
}
  0x25   :  { %s493_s0 = smov 128   ;;  %s494_s18 = smov 8  }
  0x26   :  { %38 = dma.hbm_to_vmem [thread:$0]  %s595_s1, 512, %s33_s9, [#allocation6], %s493_s0, %s493_s0, %s494_s18  }
  0x27   :  { %481 = dma.done.wait [#allocation3], 512  }
  0x28   :  { %482 = vsyncadd [#allocation3], 4294966784 }
  0x29   :  { %483 = dma.done.wait [#allocation6], 512  }
  0x2a   :  { %484 = vsyncadd [#allocation6], 4294966784  ;;  %vm64_vm0 = vcmask 261120   ;;  %v53_v0 = vld [vmem:[#allocation5] sm:$0xff]  ;;  %v54_v1 = vld [vmem:[#allocation5 + $0x8] sm:$0xff]  ;;  %v266_v26 = vlaneseq }
  0x2b   :  { %v55_v2 = vld [vmem:[#allocation5 + $0x10] sm:$0xff]  ;;  %v367_v3 = vpack.c.bf16 %v54_v1, %v53_v0  ;;  %v56_v4 = vld [vmem:[#allocation5 + $0x18] sm:$0xff]  ;;  %v49_v5 = vld [vmem:[#allocation2] sm:$0xff] }
  0x2c   :  { %v371_v6 = vpack.c.bf16 %v56_v4, %v55_v2  ;;  %361 = vmatprep.mubr.msk.f32.mxu0 %vm64_vm0, %v49_v5  ;;  %v50_v7 = vld [vmem:[#allocation2 + $0x8] sm:$0xff]  ;;  %v51_v8 = vld [vmem:[#allocation2 + $0x10] sm:$0xff]  ;;  %v52_v9 = vld [vmem:[#allocation2 + $0x18] sm:$0xff]  ;;  %v267_v29 = vand.u32 127, %v266_v26  ;;  %v269_v31 = vshrl.u32 %v266_v26, 7 }
  0x2d   :  { %368 = vmatprep.subr.bf16.mxu0 %v367_v3  ;;  %375 = vmatprep.subr.bf16.mxu1 %v367_v3  ;;  %v340_v10 = vld [vmem:[%s596_s2] ss:$0 sm:$0xff]  ;;  %v167_v19 = vld [vmem:[%s597_s3 + $0x1] sm:$0x1] }
  0x2e   :  { %370 = vmatpush3.bf16.msra.mxu0 %v367_v3  ;;  %377 = vmatpush3.bf16.msra.mxu1 %v367_v3  ;;  %v166_v18 = vld [vmem:[%s597_s3] sm:$0x1]  ;;  %v175_v21 = vunpack.c.0.s8 %v167_v19  ;;  %vm279_vm3 = vcmp.ge.s32.totalorder %v267_v29, 1  ;;  %vm280_vm4 = vcmp.lt.s32.totalorder %v267_v29, 8  ;;  %vm282_vm6 = vcmp.lt.s32.totalorder %v269_v31, 2 }
  0x2f   :  { %372 = vmatprep.subr.bf16.mxu0 %v371_v6  ;;  %376 = vmatprep.subr.bf16.mxu1 %v371_v6  ;;  %v174_v20 = vunpack.c.0.s8 %v166_v18  ;;  %vm281_vm5 = vmand %vm279_vm3, %vm280_vm4 }
  0x30   :  { %364 = vmatprep.mubr.msk.f32.mxu1 %vm64_vm0, %v51_v8  ;;  %v183_v23 = vcvt.s32.f32 %v175_v21  ;;  %vm286_vm7 = vmand %vm281_vm5, %vm282_vm6 }
  0x31   :  { %v182_v22 = vcvt.s32.f32 %v174_v20 }
  0x32   :  { %374 = vmatpush3.bf16.msra.mxu0 %v371_v6  ;;  %378 = vmatpush3.bf16.msra.mxu1 %v371_v6  ;;  %vm191_vm2 = vcmp.eq.f32.partialorder %v183_v23, -100.0 }
  0x33   :  { %vm190_vm1 = vcmp.eq.f32.partialorder %v182_v22, -100.0  ;;  %v199_v28 = vsel %vm191_vm2, 0.0, %v183_v23 }
  0x34   :  { %v198_v27 = vsel %vm190_vm1, 0.0, %v182_v22 }
  0x35   :  { %362 = vmatmul.mubr.msk.f32.vlgmr.msra.gmra.mrb[0].mxu0 %vm64_vm0, %v50_v7  ;;  %365 = vmatmul.mubr.msk.f32.vlgmr.msra.gmra.mrb[0].mxu1 %vm64_vm0, %v52_v9  ;;  %v218_v30 = vcombine.low %v198_v27, %v199_v28 }
 0x108   :  { %v363_v11 = vpop.f32.mrb[0].mxu0  ;;  %v366_v39 = vpop.f32.mrb[0].mxu1 }
 0x109   :  { %v149_v12 = vadd.f32 %v363_v11, %v340_v10  ;;  %v143_v13 = vpop.f32.mrb[1].mxu0  ;;  %v159_v40 = vadd.f32 %v366_v39, %v340_v10  ;;  %v153_v41 = vpop.f32.mrb[1].mxu1 }
 0x10a   :  { %v144_v14 = vadd.f32 %v340_v10, %v143_v13  ;;  %v154_v42 = vadd.f32 %v340_v10, %v153_v41 }
 0x10b   :  { %163 = vst [vmem:[#allocation7 + $0x8] sm:$0xff] %v149_v12  ;;  %165 = vst [vmem:[#allocation7 + $0x18] sm:$0xff] %v159_v40 }
 0x10c   :  { %162 = vst [vmem:[#allocation7] sm:$0xff] %v144_v14  ;;  %v234_v15 = vand.u32 2147483647, %v144_v14  ;;  %v206_v32 = vmax.f32 %v144_v14, 0.0  ;;  %v226_v33 = vmul.f32 %v218_v30, %v144_v14  ;;  %164 = vst [vmem:[#allocation7 + $0x10] sm:$0xff] %v154_v42 }
 0x10e   :  { %v238_v16 = vsub.f32 0.0, %v234_v15  ;;  %v230_v35 = vsub.f32 %v206_v32, %v226_v33 }
 0x110   :  { %v242_v17 = vmul.f32 1.442695, %v238_v16 }
 0x112   :  { %389 = vpow2.f32 %v242_v17 }
 0x11c   :  { %v390_v24 = vpop.eup %389 }
 0x11d   :  { %v250_v25 = vadd.f32 1.0, %v390_v24 }
 0x11f   :  { %391 = vlog2.f32 %v250_v25 }
 0x129   :  { %v392_v34 = vpop.eup %391 }
 0x12a   :  { %v255_v36 = vmul.f32 0.6931472, %v392_v34 }
 0x12c   :  { %v262_v37 = vadd.f32 %v255_v36, %v230_v35 }
 0x12e   :  { %v290_v38 = vsel %vm286_vm7, %v262_v37, 0.0 }
 0x12f   :  { %297 = vadd.xlane.f32.xlu0 %v290_v38 }
 0x1bc   :  { %v298_v43 = vpop.xlane.xlu0 %297 }
 0x1bd   :  { %v299_v44 = vrot.slane %v298_v43, 4 }
 0x1bf   :  { %v300_v45 = vadd.f32 %v299_v44, %v298_v43 }
 0x1c1   :  { %v301_v46 = vrot.slane %v300_v45, 2 }
 0x1c3   :  { %v302_v47 = vadd.f32 %v301_v46, %v300_v45 }
 0x1c5   :  { %v303_v48 = vrot.slane %v302_v47, 1 }
 0x1c7   :  { %v304_v49 = vadd.f32 %v303_v48, %v302_v47 }
 0x1c9   :  { %379 = vpush %v304_v49 }
 0x1fa   :  { %s380_s2 = spop %379 }
 0x1fb   :  { %v306_v50 = vstv %s380_s2 }
 0x1fc   :  { %307 = vst [vmem:[#allocation8] sm:$0x1] %v306_v50 }
 0x1fd   :  { %312 = vsyncadd [#allocation4], 480  ;;  %s495_s3 = smov [#allocation7]   ;;  %s496_s27 = smov [#allocation8]  }
 0x1fe   :  { %s313_s26 = sshll.u32 %s495_s3, 4  ;;  %s326_s28 = sshll.u32 %s496_s27, 4  ;;  %s314_s26 = int_to_ptr.vmem [resolvable:$true] %s313_s26  ;;  %s327_s28 = int_to_ptr.vmem [resolvable:$true] %s326_s28 }
 0x1ff   :  { %s437_s6 = scalar_lea.vmem %s314_s26, 32  ;;  %s441_s7 = scalar_lea.vmem %s314_s26, 512 }
 0x200   :  { %p438_p2 = scmp.ne.s32.totalorder %s314_s26, %s437_s6  ;;  %p442_p3 = scmp.lt.s32.totalorder %s314_s26, %s314_s26 }
 0x201   :  { %p443_p4 = scmp.lt.s32.totalorder %s441_s7, %s437_s6 }
 0x203   :  { %p444_p5 = por %p443_p4, %p442_p3 }
 0x205   :  { %p445_p6 = pnand %p444_p5, %p438_p2 }
 0x207   :  { %448 = shalt.err (!%p445_p6)
}
 0x208   :  { %s449_s10 = scalar_lea.hbm %s598_s4, 32 }
 0x209   :  { %p450_p7 = scmp.ne.s32.totalorder %s598_s4, %s449_s10  ;;  %p453_p8 = scmp.lt.u32.totalorder %s449_s10, %s598_s4 }
 0x20b   :  { %p455_p9 = pnand %p453_p8, %p450_p7 }
 0x20d   :  { %458 = shalt.err (!%p455_p9)
}
 0x20e   :  { %319 = dma.vmem_to_hbm [thread:$0]  %s314_s26, 32, %s598_s4, [#allocation4], %s490_s29, %s490_s29, %s491_s30  }
 0x20f   :  { %s459_s17 = scalar_lea.vmem %s327_s28, 16  ;;  %s463_s0 = scalar_lea.vmem %s327_s28, 32 }
 0x210   :  { %p460_p10 = scmp.ne.s32.totalorder %s327_s28, %s459_s17  ;;  %p464_p11 = scmp.lt.s32.totalorder %s327_s28, %s327_s28 }
 0x211   :  { %p465_p12 = scmp.lt.s32.totalorder %s463_s0, %s459_s17 }
 0x213   :  { %p466_p13 = por %p465_p12, %p464_p11 }
 0x215   :  { %p467_p0 = pnand %p466_p13, %p460_p10 }
 0x217   :  { %470 = shalt.err (!%p467_p0)
}
 0x218   :  { %s471_s20 = scalar_lea.hbm %s599_s5, 16 }
 0x219   :  { %p472_p1 = scmp.ne.s32.totalorder %s599_s5, %s471_s20  ;;  %p475_p2 = scmp.lt.u32.totalorder %s471_s20, %s599_s5 }
 0x21b   :  { %p477_p3 = pnand %p475_p2, %p472_p1 }
 0x21d   :  { %480 = shalt.err (!%p477_p3)
}
 0x21e   :  { %329 = dma.vmem_to_hbm [thread:$0]  %s327_s28, 16, %s599_s5, [#allocation9]  }
 0x21f   :  { %485 = dma.done.wait [#allocation4], 512  }
 0x220   :  { %486 = vsyncadd [#allocation4], 4294966784 }
 0x221   :  { %487 = dma.done.wait [#allocation9], 16  }
 0x222   :  { %488 = vsyncadd [#allocation9], 4294967280 }
 0x223   :  { %336 = vsyncpa [#allocation3], 1 }
 0x224   :  { %337 = vsyncpa [#allocation6], 1 }
 0x225   :  { %338 = vsyncpa [#allocation4], 1 }
 0x226   :  { %339 = vsyncpa [#allocation9], 1 }

</bundles_post_ra>
